<compile_context>
chip_gen: v7x
topology: tpu7x:2x2x1
jax: 0.10.0
libtpu: 0.0.40
codegen_flags: <defaults>
</compile_context>

<pallas_src>
import functools

import jax
import jax.numpy as jnp
from jax import lax
from jax.experimental import pallas as pl
from jax.experimental.pallas import tpu as pltpu

# Padded (TPU-friendly) tile sizes for this tiny problem.
D_PAD = 8     # input_dim padded  (sublane multiple)
O_PAD = 128   # output_dim padded (one lane width)


def _mmd_kernel(d_ref, w_ref, logc_ref, out_ref, *, batch):
    # d_ref   : (D_PAD, 1)      f32 VMEM   column vector d = sum_rows(X - Y), zero-padded
    # w_ref   : (D_PAD, O_PAD)  f32 VMEM   W, zero-padded
    # logc_ref: (1, 1)          f32 SMEM   log(c), precomputed in the wrapper
    # out_ref : (1, 1)          f32 SMEM   scalar loss
    d = d_ref[...]                                  # (D_PAD, 1)
    w = w_ref[...]                                  # (D_PAD, O_PAD)

    # d @ W on the VPU: lane-broadcast d, multiply, sublane-reduce.
    dw = jnp.sum(d * w, axis=0, keepdims=True)      # (1, O_PAD)

    # d (W W^T + I) d^T = ||d W||^2 + ||d||^2 ; padded entries are zero so the
    # full-tile sums equal the true sums.
    quad = jnp.sum(dw * dw) + jnp.sum(d * d)

    # log(||W||_F) = 0.5 * log(sum(W*W)); single EUP log in the kernel.
    log_norm_w = 0.5 * jnp.log(jnp.sum(w * w))

    inv_b2 = jnp.float32(1.0 / (batch * batch))
    out_ref[0, 0] = quad * inv_b2 - log_norm_w - logc_ref[0, 0]


@jax.jit
def mmd_loss(X, Y, W, c):
    """Pallas implementation of MMDLoss(CustomKernel(W, c))(X, Y)."""
    X = jnp.asarray(X, jnp.float32)
    Y = jnp.asarray(Y, jnp.float32)
    W = jnp.asarray(W, jnp.float32)
    batch, in_dim = X.shape
    out_dim = W.shape[1]
    # TODO(synk): a gridded/tiled variant would be needed for shapes beyond these pads.
    assert X.shape == Y.shape
    assert in_dim <= D_PAD and out_dim <= O_PAD

    zero = jnp.float32(0.0)
    # Column sum of (X - Y); fuses with the pads inside this jitted wrapper.
    d = jnp.sum(X - Y, axis=0)                                     # (in_dim,)
    d_pad = lax.pad(d, zero, [(0, D_PAD - in_dim, 0)]).reshape(D_PAD, 1)
    w_pad = lax.pad(W, zero, [(0, D_PAD - in_dim, 0), (0, O_PAD - out_dim, 0)])
    log_c = jnp.log(jnp.asarray(c, jnp.float32)).reshape(1, 1)     # NaN for c <= 0, like torch

    kernel = functools.partial(_mmd_kernel, batch=batch)

    out = pl.pallas_call(
        kernel,
        out_shape=jax.ShapeDtypeStruct((1, 1), jnp.float32),
        in_specs=[
            pl.BlockSpec(memory_space=pltpu.MemorySpace.VMEM),   # d_pad
            pl.BlockSpec(memory_space=pltpu.MemorySpace.VMEM),   # w_pad
            pl.BlockSpec(memory_space=pltpu.MemorySpace.SMEM),   # log(c)
        ],
        out_specs=pl.BlockSpec(memory_space=pltpu.MemorySpace.SMEM),
    )(d_pad, w_pad, log_c)

    # torch returns a shape-(1,) tensor (because c has shape (1,)); match it.
    return out.reshape((1,))


def _mmd_loss_ref(X, Y, W, c):
    """Pure-JAX reference mirroring the PyTorch code exactly."""
    Z = jnp.vstack([X, Y])
    WTW_I = W @ W.T + jnp.eye(W.shape[0], dtype=W.dtype)
    K = Z @ WTW_I @ Z.T + c
    B = X.shape[0]
    XX = K[:B, :B].mean()
    XY = K[:B, B:].mean()
    YY = K[B:, B:].mean()
    norm_W = jnp.sqrt(jnp.sum(W * W))
    return XX - 2 * XY + YY - jnp.log(norm_W) - jnp.log(c)


if __name__ == "__main__":
    batch_size = 2
    input_dim = 2
    output_dim = 3

    key = jax.random.PRNGKey(0)
    kx, ky, kw = jax.random.split(key, 3)
    X = jax.random.normal(kx, (batch_size, input_dim), dtype=jnp.float32)
    Y = jax.random.normal(ky, (batch_size, input_dim), dtype=jnp.float32)
    W = jax.random.normal(kw, (input_dim, output_dim), dtype=jnp.float32)  # CustomKernel.W
    c = jnp.float32(1.0)                                                   # CustomKernel.c

    loss = jax.block_until_ready(mmd_loss(X, Y, W, c))
    ref = jax.block_until_ready(_mmd_loss_ref(X, Y, W, c))

    assert loss.shape == (1,)
    assert jnp.allclose(loss[0], ref, rtol=1e-5, atol=1e-5), (loss, ref)
    print("KERNEL_OK")
</pallas_src>

<mosaic_0001>
module attributes {stable_mosaic.version = 11 : i64} {
  func.func @_mmd_kernel(%arg0: memref<8x1xf32, #tpu.memory_space<vmem>>, %arg1: memref<8x128xf32, #tpu.memory_space<vmem>>, %arg2: memref<1x1xf32, #tpu.memory_space<smem>>, %arg3: memref<1x1xf32, #tpu.memory_space<smem>>) attributes {dimension_semantics = [], scalar_prefetch = 0 : i64, scratch_operands = 0 : i64, tpu.core_type = #tpu.core_type<tc>} {
    %c0 = arith.constant 0 : index
    %c0_0 = arith.constant 0 : index
    %0 = vector.load %arg0[%c0, %c0_0] : memref<8x1xf32, #tpu.memory_space<vmem>>, vector<8x1xf32>
    %c0_1 = arith.constant 0 : index
    %c0_2 = arith.constant 0 : index
    %1 = vector.load %arg1[%c0_1, %c0_2] : memref<8x128xf32, #tpu.memory_space<vmem>>, vector<8x128xf32>
    %2 = vector.broadcast %0 : vector<8x1xf32> to vector<8x128xf32>
    %3 = arith.mulf %2, %1 : vector<8x128xf32>
    %cst = arith.constant dense<0.000000e+00> : vector<128xf32>
    %4 = vector.multi_reduction <add>, %3, %cst [0] : vector<8x128xf32> to vector<128xf32>
    %5 = vector.shape_cast %4 : vector<128xf32> to vector<1x128xf32>
    %6 = arith.mulf %5, %5 : vector<1x128xf32>
    %7 = vector.shape_cast %6 : vector<1x128xf32> to vector<1x1x128xf32>
    %cst_3 = arith.constant dense<0.000000e+00> : vector<1xf32>
    %8 = vector.multi_reduction <add>, %7, %cst_3 [1, 2] : vector<1x1x128xf32> to vector<1xf32>
    %9 = vector.shape_cast %8 : vector<1xf32> to vector<1x1x1xf32>
    %10 = vector.extract %9[0, 0, 0] : f32 from vector<1x1x1xf32>
    %11 = arith.mulf %0, %0 : vector<8x1xf32>
    %12 = vector.shape_cast %11 : vector<8x1xf32> to vector<1x8x1xf32>
    %cst_4 = arith.constant dense<0.000000e+00> : vector<1xf32>
    %13 = vector.multi_reduction <add>, %12, %cst_4 [1, 2] : vector<1x8x1xf32> to vector<1xf32>
    %14 = vector.shape_cast %13 : vector<1xf32> to vector<1x1x1xf32>
    %15 = vector.extract %14[0, 0, 0] : f32 from vector<1x1x1xf32>
    %16 = arith.addf %10, %15 : f32
    %17 = arith.mulf %1, %1 : vector<8x128xf32>
    %18 = vector.shape_cast %17 : vector<8x128xf32> to vector<1x8x128xf32>
    %cst_5 = arith.constant dense<0.000000e+00> : vector<1xf32>
    %19 = vector.multi_reduction <add>, %18, %cst_5 [1, 2] : vector<1x8x128xf32> to vector<1xf32>
    %20 = vector.shape_cast %19 : vector<1xf32> to vector<1x1x1xf32>
    %21 = vector.extract %20[0, 0, 0] : f32 from vector<1x1x1xf32>
    %22 = math.log %21 : f32
    %cst_6 = arith.constant 5.000000e-01 : f32
    %23 = arith.mulf %cst_6, %22 : f32
    %cst_7 = arith.constant 2.500000e-01 : f32
    %24 = arith.mulf %16, %cst_7 : f32
    %25 = arith.subf %24, %23 : f32
    %c0_8 = arith.constant 0 : index
    %c0_9 = arith.constant 0 : index
    %26 = memref.load %arg2[%c0_8, %c0_9] : memref<1x1xf32, #tpu.memory_space<smem>>
    %27 = arith.subf %25, %26 : f32
    %c0_10 = arith.constant 0 : index
    %c0_11 = arith.constant 0 : index
    %28 = memref.load %arg3[%c0_10, %c0_11] : memref<1x1xf32, #tpu.memory_space<smem>>
    memref.store %27, %arg3[%c0_10, %c0_11] : memref<1x1xf32, #tpu.memory_space<smem>>
    return
  }
}

</mosaic_0001>

<bundles_post_ra>
// kernel: mmd_loss.1
= control target key start
LH: loop header
LB: loop body
LE: loop exit
PB: predicated region body
PF: predicated region fallthrough
CT: control target
= control target key end

     0   :  { %s157_s0 = inlined_call_operand.vmem [shape: f32[8,1], index: 0, kind: input, shape index: {}]   ;;  %s158_s1 = inlined_call_operand.vmem [shape: f32[8,128], index: 1, kind: input, shape index: {}]   ;;  %s159_s2 = inlined_call_operand.<no memory space> [shape: f32[1,1], index: 2, kind: input, shape index: {}]   ;;  %s160_s3 = inlined_call_operand.hbm [shape: f32[1,1], index: 3, kind: output, shape index: {}]  }
   0x1   :  { %v16_v0 = vld [vmem:[%s157_s0] sm:$0xff] }
   0x2   :  { %9 = vsyncpa [#allocation4], 0  ;;  %v114_v1 = vmov 0   ;;  %v42_v2 = vmul.f32 %v16_v0, %v16_v0  ;;  %vm43_vm0 = vcmask 7168   ;;  %v17_v4 = vld [vmem:[%s158_s1] sm:$0xff]  ;;  %vm31_vm1 = vcmask 1040384  }
   0x3   :  { %99 = vset.pattern.permute.xlu0 %v114_v1  ;;  %v55_v5 = vmul.f32 %v17_v4, %v17_v4  ;;  %s102_s27 = scalar_lea.hbm %s160_s3, 16 }
   0x4   :  { %20 = vperm.xlu0 %99, %v16_v0   ;;  %v44_v3 = vsel %vm43_vm0, %v42_v2, 0.0  ;;  %p103_p0 = scmp.ne.s32.totalorder %s160_s3, %s102_s27  ;;  %p106_p1 = scmp.lt.u32.totalorder %s102_s27, %s160_s3 }
   0x5   :  { %45 = vadd.xlane.f32.xlu1 %v44_v3 }
   0x6   :  { %p108_p2 = pnand %p106_p1, %p103_p0 }
   0x9   :  { %56 = vadd.xlane.f32.xlu1 %v55_v5 }
  0x83   :  { %v21_v6 = vpop.permute.xlu0 %20 }
  0x84   :  { %v23_v7 = vmul.f32 %v21_v6, %v17_v4 }
  0x86   :  { %v24_v8 = vrot.slane %v23_v7, 4 }
  0x88   :  { %v25_v9 = vadd.f32 %v24_v8, %v23_v7 }
  0x8a   :  { %v26_v10 = vrot.slane %v25_v9, 2 }
  0x8c   :  { %v27_v11 = vadd.f32 %v26_v10, %v25_v9 }
  0x8e   :  { %v28_v12 = vrot.slane %v27_v11, 1 }
  0x90   :  { %v29_v13 = vadd.f32 %v28_v12, %v27_v11 }
  0x92   :  { %v30_v14 = vmul.f32 %v29_v13, %v29_v13  ;;  %v46_v16 = vpop.xlane.xlu1 %45 }
  0x93   :  { %v47_v18 = vrot.slane %v46_v16, 4 }
  0x94   :  { %v32_v15 = vsel %vm31_vm1, %v30_v14, 0.0 }
  0x95   :  { %33 = vadd.xlane.f32.xlu0 %v32_v15  ;;  %v48_v20 = vadd.f32 %v47_v18, %v46_v16 }
  0x96   :  { %v57_v17 = vpop.xlane.xlu1 %56 }
  0x97   :  { %v58_v19 = vrot.slane %v57_v17, 4  ;;  %v49_v22 = vrot.slane %v48_v20, 2 }
  0x99   :  { %v59_v21 = vadd.f32 %v58_v19, %v57_v17  ;;  %v50_v27 = vadd.f32 %v49_v22, %v48_v20 }
  0x9b   :  { %v60_v24 = vrot.slane %v59_v21, 2  ;;  %v51_v31 = vrot.slane %v50_v27, 1 }
  0x9d   :  { %v61_v28 = vadd.f32 %v60_v24, %v59_v21  ;;  %v52_v35 = vadd.f32 %v51_v31, %v50_v27 }
  0x9f   :  { %v62_v33 = vrot.slane %v61_v28, 1 }
  0xa1   :  { %v63_v36 = vadd.f32 %v62_v33, %v61_v28 }
 0x122   :  { %v34_v23 = vpop.xlane.xlu0 %33 }
 0x123   :  { %v35_v25 = vrot.slane %v34_v23, 4 }
 0x125   :  { %v36_v26 = vadd.f32 %v35_v25, %v34_v23 }
 0x127   :  { %v37_v29 = vrot.slane %v36_v26, 2 }
 0x129   :  { %v38_v30 = vadd.f32 %v37_v29, %v36_v26 }
 0x12b   :  { %v39_v32 = vrot.slane %v38_v30, 1 }
 0x12d   :  { %v40_v34 = vadd.f32 %v39_v32, %v38_v30 }
 0x12f   :  { %89 = vpush %v40_v34 }
 0x130   :  { %91 = vpush %v52_v35 }
 0x131   :  { %93 = vpush %v63_v36 }
 0x160   :  { %s90_s0 = spop %89 }
 0x161   :  { %s92_s1 = spop %91 }
 0x162   :  { %s94_s16 = spop %93  ;;  %s54_s17 = sadd.f32 %s92_s1, %s90_s0 }
 0x163   :  { %v65_v37 = vstv %s94_s16 }
 0x164   :  { %100 = vlog2.f32 %v65_v37  ;;  %s70_s18 = smul.f32 0.25, %s54_s17 }
 0x16e   :  { %v101_v38 = vpop.eup %100 }
 0x16f   :  { %v67_v39 = vmul.f32 0.6931472, %v101_v38 }
 0x171   :  { %95 = vpush %v67_v39 }
 0x1a2   :  { %s96_s19 = spop %95 }
 0x1a3   :  { %s69_s20 = smul.f32 0.5, %s96_s19 }
 0x1a5   :  { %s71_s21 = ssub.f32 %s70_s18, %s69_s20 }
 0x1a7   :  { %s73_s24 = ssub.f32 %s71_s21, %s159_s2 }
 0x1a9   :  { %75 = sst [smem:[#allocation3]] %s73_s24 }
 0x1aa   :  { %111 = shalt.err (!%p108_p2)
}
 0x1ab   :  { %s115_s5 = smov [#allocation3]  }
 0x1ac   :  { %83 = dma.smem_to_hbm %s115_s5, 16, %s160_s3, [#allocation4]  }
 0x1ad   :  { %112 = dma.done.wait [#allocation4], 16  }
 0x1ae   :  { %113 = vsyncadd [#allocation4], 4294967280 }
 0x1af   :  { %87 = sfence }
 0x1b0   :  { %88 = vsyncpa [#allocation4], 1 }

</bundles_post_ra>
